<compile_context>
chip_gen: v6e
topology: v6e:2x2x1
jax: 0.10.0
libtpu: 0.0.40
codegen_flags: <defaults>
</compile_context>

<pallas_src>
import functools
import math

import jax
import jax.numpy as jnp
from jax.experimental import pallas as pl
from jax.experimental.pallas import tpu as pltpu

# Squeezed block-dim sentinel (older jax versions spell it `None`).
_SQUEEZED = pl.Squeezed() if hasattr(pl, "Squeezed") else None
_HAS_BUFFERED = hasattr(pl, "Buffered")


def _pick_row_tile(n: int) -> int:
    """Largest 128-multiple row tile dividing n whose bf16 adj slab (double
    buffered) stays well inside the scoped-VMEM defaults; else full n."""
    divisors = [c for c in (512, 256, 128) if n % c == 0]
    if not divisors:
        return n
    budget = 8 << 20                       # bytes, per double-buffered adj tile
    for c in divisors:                     # largest first
        if 2 * c * n * 2 <= budget:
            return c
    return divisors[-1]


def _const_block_spec(block_shape, index_map, single_buffer):
    """BlockSpec for inputs whose block changes at most once per batch.

    Double-buffering them wastes VMEM (v7x has only 64 MiB physical); request
    a single buffer when the API supports it — the exposed DMA only happens at
    batch boundaries.
    """
    if single_buffer and _HAS_BUFFERED:
        return pl.BlockSpec(block_shape, index_map, pipeline_mode=pl.Buffered(1))
    return pl.BlockSpec(block_shape, index_map)


# ---------------------------------------------------------------------------
# Pass 1: degree sweep.  Pure adjacency stream; MXU does the exact f32 row
# sums, VPU/XLU extract the diagonal (hidden under the DMA).
# ---------------------------------------------------------------------------
def _degree_kernel(adj_ref, dinv_ref, loopc_ref, *, loop_val):
    adj = adj_ref[...]                                   # (TM, N), streamed dtype
    tm, n = adj.shape

    # Exact row degrees: bf16 x bf16 -> f32 MXU matvec (f32 accumulation keeps
    # integer degrees exact; no (TM, N) f32 temporary).
    ones = jnp.ones((n, 128), dtype=adj.dtype)
    deg = jnp.dot(adj, ones, preferred_element_type=jnp.float32)[:, :1]  # (TM, 1)

    if loop_val is None:
        loopc = jnp.zeros((tm, 1), jnp.float32)
    else:
        # diag[i] = adj[r0 + i, r0 + i]; single nonzero per row so the bf16
        # reduce is exact.  Done only in this DMA-bound pass.
        r0 = pl.program_id(1) * tm
        rows = jax.lax.broadcasted_iota(jnp.int32, (tm, n), 0) + r0
        cols = jax.lax.broadcasted_iota(jnp.int32, (tm, n), 1)
        diag = jnp.sum(jnp.where(rows == cols, adj, 0), axis=-1,
                       keepdims=True).astype(jnp.float32)               # (TM, 1)
        loopc = loop_val - diag            # self-loop correction coefficient
        deg = deg + loopc

    dinv_ref[...] = jax.lax.rsqrt(jnp.maximum(deg, 1.0))
    loopc_ref[...] = loopc


# ---------------------------------------------------------------------------
# Pass 2: aggregation.  Per batch (i == 0): xw_scaled = dinv * (x @ W) into a
# single-copy bf16 VMEM scratch.  Per row tile: bf16 x bf16 MXU GEMM with f32
# accumulator + algebraic self-loop correction + bias.
# ---------------------------------------------------------------------------
def _aggregate_kernel(x_ref, w_ref, dinv_ref, loopc_ref, adj_ref, b_ref,
                      out_ref, xws_ref, *, row_tile, apply_loop):
    i = pl.program_id(1)
    tm = row_tile
    r0 = pl.multiple_of(i * tm, tm)

    @pl.when(i == 0)
    def _():
        # Feature GEMM in f32 (tiny vs the aggregation), scaled by the column
        # D^{-1/2}, stored bf16.  Never written to HBM.
        xw = jnp.dot(x_ref[...], w_ref[...], preferred_element_type=jnp.float32)
        xws_ref[...] = (dinv_ref[...] * xw).astype(xws_ref.dtype)

    # bf16 adj straight into the MXU, f32 accumulator.
    acc = jnp.dot(adj_ref[...], xws_ref[...],
                  preferred_element_type=jnp.float32)                  # (TM, F_pad)

    if apply_loop:
        # A_loop @ y = adj @ y + (loop_val - diag) * y_rows   (exact algebra,
        # no where/select over the (TM, N) tile).
        xws_tile = xws_ref[pl.ds(r0, tm), :].astype(jnp.float32)       # (TM, F_pad)
        acc = acc + loopc_ref[...] * xws_tile

    dinv_tile = dinv_ref[pl.ds(r0, tm), :]                             # (TM, 1) f32
    out_ref[...] = (dinv_tile * acc + b_ref[...]).astype(out_ref.dtype)


def dense_gcn_conv(x, adj, weight, bias=None, *, add_loop=True, improved=False,
                   mask=None, row_tile=None, adj_dtype=jnp.bfloat16,
                   compute_dtype=jnp.bfloat16):
    """Pallas DenseGCNConv forward.

    adj_dtype: dtype the adjacency is streamed in (default bfloat16 — exact
      for 0/1 adjacencies; pass None / jnp.float32 for weighted adjacencies).
    compute_dtype: dtype of the in-VMEM xw_scaled slab (default bfloat16).
    """
    if x.ndim == 2:
        x = x[None]
    if adj.ndim == 2:
        adj = adj[None]
    B, N, _ = adj.shape
    F_in = x.shape[-1]
    F_out = weight.shape[1]
    if bias is None:
        bias = jnp.zeros((F_out,), dtype=weight.dtype)

    # Compress the dominant HBM stream in the wrapper (callers passing f32
    # adjacencies otherwise pay 2x DMA on both passes).
    if adj_dtype is not None and adj.dtype != adj_dtype:
        adj = adj.astype(adj_dtype)

    loop_val = None if not add_loop else (2.0 if improved else 1.0)

    # Lane-dense output: pad F_out up to a multiple of 128 (sliced off below).
    F_pad = ((F_out + 127) // 128) * 128
    if F_pad != F_out:
        weight = jnp.pad(weight, ((0, 0), (0, F_pad - F_out)))
        bias = jnp.pad(bias, (0, F_pad - F_out))
    bias2d = bias.reshape(1, F_pad).astype(jnp.float32)

    tm = row_tile if row_tile is not None else _pick_row_tile(N)
    assert N % tm == 0, "row_tile must divide N"
    assert tm == N or tm % 8 == 0, "row_tile must be the full N or a multiple of 8"
    n_tiles = N // tm

    # ---- Pass 1: row degrees / self-loop correction --------------------------
    dinv, loopc = pl.pallas_call(
        functools.partial(_degree_kernel, loop_val=loop_val),
        out_shape=(jax.ShapeDtypeStruct((B, N, 1), jnp.float32),
                   jax.ShapeDtypeStruct((B, N, 1), jnp.float32)),
        grid_spec=pltpu.PrefetchScalarGridSpec(
            num_scalar_prefetch=0,
            grid=(B, n_tiles),
            in_specs=[pl.BlockSpec((_SQUEEZED, tm, N), lambda b, i: (b, i, 0))],
            out_specs=[pl.BlockSpec((_SQUEEZED, tm, 1), lambda b, i: (b, i, 0)),
                       pl.BlockSpec((_SQUEEZED, tm, 1), lambda b, i: (b, i, 0))],
        ),
        compiler_params=pltpu.CompilerParams(
            dimension_semantics=("parallel", "parallel")),
    )(adj)

    # ---- Pass 2: feature transform (per batch) + normalized aggregation ------
    def _aggregate(single_buffer):
        in_specs = [
            _const_block_spec((_SQUEEZED, N, F_in), lambda b, i: (b, 0, 0),
                              single_buffer),                       # x (per batch)
            _const_block_spec((F_in, F_pad), lambda b, i: (0, 0),
                              single_buffer),                       # W
            _const_block_spec((_SQUEEZED, N, 1), lambda b, i: (b, 0, 0),
                              single_buffer),                       # dinv (per batch)
            pl.BlockSpec((_SQUEEZED, tm, 1), lambda b, i: (b, i, 0)),   # loop corr
            pl.BlockSpec((_SQUEEZED, tm, N), lambda b, i: (b, i, 0)),   # adj tile
            _const_block_spec((1, F_pad), lambda b, i: (0, 0),
                              single_buffer),                       # bias
        ]
        return pl.pallas_call(
            functools.partial(_aggregate_kernel, row_tile=tm,
                              apply_loop=loop_val is not None),
            out_shape=jax.ShapeDtypeStruct((B, N, F_pad), x.dtype),
            grid_spec=pltpu.PrefetchScalarGridSpec(
                num_scalar_prefetch=0,
                grid=(B, n_tiles),
                in_specs=in_specs,
                out_specs=pl.BlockSpec((_SQUEEZED, tm, F_pad),
                                       lambda b, i: (b, i, 0)),
                # Single-copy xw_scaled slab, reused by every row tile of the
                # batch (the i axis is therefore "arbitrary", not "parallel").
                scratch_shapes=[pltpu.VMEM((N, F_pad), compute_dtype)],
            ),
            compiler_params=pltpu.CompilerParams(
                dimension_semantics=("parallel", "arbitrary")),
        )(x, weight, dinv, loopc, adj, bias2d)

    try:
        out = _aggregate(True)
    except Exception:
        # pipeline_mode=pl.Buffered(1) not supported on this jax/Mosaic build;
        # fall back to default double-buffering (identical numerics).
        if not _HAS_BUFFERED:
            raise
        out = _aggregate(False)

    if F_pad != F_out:
        out = out[..., :F_out]
    if mask is not None:
        # TODO(synk): fold the node mask into the aggregation kernel.
        out = out * mask.reshape(B, N, 1).astype(out.dtype)
    return out


def _reference(x, adj, weight, bias):
    """Pure-JAX reference mirroring the PyTorch forward (add_loop, improved=False)."""
    B, N, _ = adj.shape
    eye = jnp.eye(N, dtype=adj.dtype)
    adj = jnp.where(eye[None] > 0, 1.0, adj)
    out = x @ weight
    deg_inv_sqrt = jnp.maximum(adj.sum(-1), 1.0) ** -0.5
    adj = deg_inv_sqrt[..., :, None] * adj * deg_inv_sqrt[..., None, :]
    return adj @ out + bias


if __name__ == "__main__":
    B, N, F_in, F_out = 2, 256, 16, 32
    key = jax.random.PRNGKey(0)
    k_x, k_adj, k_w = jax.random.split(key, 3)

    x = jax.random.normal(k_x, (B, N, F_in), dtype=jnp.float32)
    # Sparse-ish symmetric 0/1 adjacency with no self-loops.
    a = (jax.random.uniform(k_adj, (B, N, N)) > 0.9).astype(jnp.float32)
    adj = jnp.clip(a + jnp.transpose(a, (0, 2, 1)), 0.0, 1.0)
    adj = adj * (1.0 - jnp.eye(N, dtype=jnp.float32)[None])

    # Deterministic Glorot-uniform weight, zero bias (matches reset_parameters).
    stdv = math.sqrt(6.0 / (F_in + F_out))
    weight = jax.random.uniform(k_w, (F_in, F_out), minval=-stdv, maxval=stdv,
                                dtype=jnp.float32)
    bias = jnp.zeros((F_out,), dtype=jnp.float32)

    # row_tile=128 -> 2 row tiles per batch, exercising the tiled path,
    # the per-batch xw_scaled scratch and the algebraic self-loop correction.
    out = dense_gcn_conv(x, adj, weight, bias, row_tile=128)
    out = jax.block_until_ready(out)

    ref = _reference(x, adj, weight, bias)
    assert out.shape == (B, N, F_out)
    err = float(jnp.max(jnp.abs(out - ref)))
    # Tolerance sized for the bf16 xw_scaled / bf16 adjacency streaming path.
    assert jnp.allclose(out, ref, atol=5e-3, rtol=5e-3), err
    print("KERNEL_OK")
</pallas_src>

<mosaic_0001>
module attributes {stable_mosaic.version = 11 : i64} {
  func.func @_degree_kernel(%arg0: i32, %arg1: i32, %arg2: memref<1x128x256xbf16, #tpu.memory_space<vmem>>, %arg3: memref<1x128x1xf32, #tpu.memory_space<vmem>>, %arg4: memref<1x128x1xf32, #tpu.memory_space<vmem>>) attributes {dimension_semantics = [#tpu.dimension_semantics<parallel>, #tpu.dimension_semantics<parallel>], iteration_bounds = array<i64: 2, 2>, scalar_prefetch = 0 : i64, scratch_operands = 0 : i64, tpu.core_type = #tpu.core_type<tc>, window_params = [{transform_indices = @transform_0, window_bounds = array<i64: 1, 128, 256>}, {transform_indices = @transform_1, window_bounds = array<i64: 1, 128, 1>}, {transform_indices = @transform_2, window_bounds = array<i64: 1, 128, 1>}]} {
    %c0 = arith.constant 0 : index
    %c0_0 = arith.constant 0 : index
    %c0_1 = arith.constant 0 : index
    %0 = vector.load %arg2[%c0, %c0_0, %c0_1] : memref<1x128x256xbf16, #tpu.memory_space<vmem>>, vector<1x128x256xbf16>
    %1 = vector.shape_cast %0 : vector<1x128x256xbf16> to vector<128x256xbf16>
    %cst = arith.constant 1.000000e+00 : bf16
    %2 = vector.broadcast %cst : bf16 to vector<256x128xbf16>
    %cst_2 = arith.constant dense<0.000000e+00> : vector<128x128xf32>
    %3 = tpu.matmul %1, %2, %cst_2 {dimension_numbers = #tpu.dot_dimension_numbers<[1], [0], [0], [1], [0, 0, 1, 1], [], []>} : vector<128x256xbf16>, vector<256x128xbf16>, vector<128x128xf32> -> vector<128x128xf32>
    %4 = vector.extract_strided_slice %3 {offsets = [0, 0], sizes = [128, 1], strides = [1, 1]} : vector<128x128xf32> to vector<128x1xf32>
    %c128_i32 = arith.constant 128 : i32
    %5 = arith.muli %arg1, %c128_i32 : i32
    %6 = tpu.iota {dimensions = array<i32: 0>} : vector<128x256xi32>
    %7 = vector.broadcast %5 : i32 to vector<128x256xi32>
    %8 = arith.addi %6, %7 : vector<128x256xi32>
    %9 = tpu.iota {dimensions = array<i32: 1>} : vector<128x256xi32>
    %10 = arith.cmpi eq, %8, %9 : vector<128x256xi32>
    %c0_i32 = arith.constant 0 : i32
    %11 = arith.sitofp %c0_i32 : i32 to bf16
    %12 = vector.broadcast %11 : bf16 to vector<128x256xbf16>
    %13 = arith.select %10, %1, %12 : vector<128x256xi1>, vector<128x256xbf16>
    %14 = arith.extf %13 : vector<128x256xbf16> to vector<128x256xf32>
    %cst_3 = arith.constant dense<0.000000e+00> : vector<128xf32>
    %15 = vector.multi_reduction <add>, %14, %cst_3 [1] : vector<128x256xf32> to vector<128xf32>
    %16 = vector.shape_cast %15 : vector<128xf32> to vector<128x1xf32>
    %17 = arith.truncf %16 : vector<128x1xf32> to vector<128x1xbf16>
    %18 = arith.extf %17 : vector<128x1xbf16> to vector<128x1xf32>
    %cst_4 = arith.constant 1.000000e+00 : f32
    %19 = vector.broadcast %cst_4 : f32 to vector<128x1xf32>
    %20 = arith.subf %19, %18 : vector<128x1xf32>
    %21 = arith.addf %4, %20 : vector<128x1xf32>
    %cst_5 = arith.constant 1.000000e+00 : f32
    %22 = vector.broadcast %cst_5 : f32 to vector<128x1xf32>
    %23 = arith.maximumf %21, %22 : vector<128x1xf32>
    %24 = math.rsqrt %23 : vector<128x1xf32>
    %c0_6 = arith.constant 0 : index
    %c0_7 = arith.constant 0 : index
    %c0_8 = arith.constant 0 : index
    %25 = vector.load %arg3[%c0_6, %c0_7, %c0_8] : memref<1x128x1xf32, #tpu.memory_space<vmem>>, vector<1x128x1xf32>
    %26 = vector.shape_cast %25 : vector<1x128x1xf32> to vector<128x1xf32>
    %27 = vector.shape_cast %24 : vector<128x1xf32> to vector<1x128x1xf32>
    tpu.vector_store %arg3[%c0_6, %c0_7, %c0_8], %27 {strides = array<i32>} : memref<1x128x1xf32, #tpu.memory_space<vmem>>, vector<1x128x1xf32>,
    %c0_9 = arith.constant 0 : index
    %c0_10 = arith.constant 0 : index
    %c0_11 = arith.constant 0 : index
    %28 = vector.load %arg4[%c0_9, %c0_10, %c0_11] : memref<1x128x1xf32, #tpu.memory_space<vmem>>, vector<1x128x1xf32>
    %29 = vector.shape_cast %28 : vector<1x128x1xf32> to vector<128x1xf32>
    %30 = vector.shape_cast %20 : vector<128x1xf32> to vector<1x128x1xf32>
    tpu.vector_store %arg4[%c0_9, %c0_10, %c0_11], %30 {strides = array<i32>} : memref<1x128x1xf32, #tpu.memory_space<vmem>>, vector<1x128x1xf32>,
    return
  }
  func.func @transform_0(%arg0: i32, %arg1: i32) -> (i32, i32, i32) {
    %c0_i32 = arith.constant 0 : i32
    %c0_i32_0 = arith.constant 0 : i32
    return %arg0, %arg1, %c0_i32 : i32, i32, i32
  }
  func.func @transform_1(%arg0: i32, %arg1: i32) -> (i32, i32, i32) {
    %c0_i32 = arith.constant 0 : i32
    %c0_i32_0 = arith.constant 0 : i32
    return %arg0, %arg1, %c0_i32 : i32, i32, i32
  }
  func.func @transform_2(%arg0: i32, %arg1: i32) -> (i32, i32, i32) {
    %c0_i32 = arith.constant 0 : i32
    %c0_i32_0 = arith.constant 0 : i32
    return %arg0, %arg1, %c0_i32 : i32, i32, i32
  }
}

</mosaic_0001>

<bundles_post_ra>
// kernel: tpu_custom_call.1
= control target key start
LH: loop header
LB: loop body
LE: loop exit
PB: predicated region body
PF: predicated region fallthrough
CT: control target
= control target key end

     0   :  { %8 = vsyncpa [#allocation3], 0  ;;  %s1682_s0 = inlined_call_operand.hbm [shape: bf16[2,256,256], index: 0, kind: input, shape index: {}]   ;;  %s1683_s1 = inlined_call_operand.vmem [shape: f32[2,256,1], index: 1, kind: output, shape index: {0}]   ;;  %s1684_s2 = inlined_call_operand.vmem [shape: f32[2,256,1], index: 2, kind: output, shape index: {1}]  }
   0x1   :  { %10 = vsyncpa [#allocation3 + $0x1], 0  ;;  %s1217_s9 = smov 0   ;;  %s1219_s10 = smov 0  }
   0x2   :  { %s1221_s11 = smov 0   ;;  %s1223_s12 = smov 0  }
   0x3   :  { %s1225_s13 = smov 0   ;;  %s1227_s14 = smov 0  }
   0x4   :  { %s1229_s15 = smov 0   ;;  %s1231_s16 = smov 0  }
   0x5 LB: > { %s863_s17 = sadd.s32 4294967295, %s1196_s16   ;;  %s25_s18 = sadd.s32 1, %s1188_s14  ;;  %s1196_s16 = sphi %s1231_s16, %s16_s16   ;;  %s1192_s15 = sphi %s1229_s15, %s1694_s15   ;;  %s1188_s14 = sphi %s1227_s14, %s1693_s14   ;;  %s1184_s13 = sphi %s1225_s13, %s1692_s13   ;;  %s1180_s12 = sphi %s1223_s12, %s1691_s12   ;;  %s1176_s11 = sphi %s1221_s11, %s1690_s11   ;;  %s1172_s10 = sphi %s1219_s10, %s1689_s10   ;;  %s1168_s9 = sphi %s1217_s9, %s1688_s9  }
   0x6   : > { %p26_p0 = scmp.ge.s32.totalorder %s25_s18, 2  ;;  %s28_s19 = sadd.s32 1, %s1192_s15 }
   0x7   : > { %s37_s20 = sadd.s32 1, %s1176_s11  ;;  %p44_p1 = scmp.ne.s32.totalorder %s1176_s11, %s1172_s10 }
   0x8   : > { %s1696_s18 = smov (%p26_p0, %s25_s18), 0  ;;  %s1698_s19 = smov (!%p26_p0, %s28_s19), %s1192_s15 }
   0x9   : > { %s33_s21 = ssub.s32 %s1188_s14, %s1696_s18  ;;  %p45_p2 = scmp.eq.s32.totalorder %s1196_s16, 0 }
   0xa   : > { %p30_p3 = scmp.ge.s32.totalorder %s1698_s19, 2  ;;  %p50_p4 = scmp.ne.s32.totalorder %s1172_s10, %s1168_s9 }
   0xb   : > { %p1268_p5 = por %p45_p2, %p44_p1  ;;  %p51_p6 = scmp.eq.s32.totalorder %s863_s17, 0 }
   0xc   : > { %s1700_s19 = smov (%p30_p3, %s1698_s19), 0  ;;  %p986_p8 = scmp.lt.s32.totalorder %s1196_s16, 4 }
   0xd   : > { %p1274_p7 = por %p51_p6, %p50_p4  ;;  %s32_s24 = ssub.s32 %s1192_s15, %s1700_s19 }
   0xe   : > { %s34_s25 = sor.u32 %s33_s21, %s32_s24  ;;  %s130_s26 = sand.u32 1, %s1176_s11  }
   0xf   : > { %p35_p9 = scmp.eq.s32.totalorder %s34_s25, 0  ;;  %s867_s27 = sshll.u32 %s130_s26, 7 }
  0x10   : > { %s899_s28 = sshll.u32 %s1188_s14, 5  ;;  %s870_s30 = sshll.u32 %s1192_s15, 6 }
  0x11   : > { %s1284_s29 = scalar_select %p35_p9, %s1176_s11, %s37_s20  }
  0x12   : > { %s141_s3 = sadd.s32 %s899_s28, %s870_s30  ;;  %s134_s4 = scalar_lea.vmem [#allocation2], %s867_s27 }
  0x13   : > { %s144_s5 = sshll.u32 %s134_s4, 4  ;;  %s871_s6 = sshll.u32 %s141_s3, 6  ;;  %s145_s5 = int_to_ptr.vmem [resolvable:$true] %s144_s5 }
  0x14   : > { %s143_s9 = scalar_lea.hbm %s1682_s0, %s871_s6  ;;  %p1294_p10 = pnand %p986_p8, %p1268_p5 }
  0x15   : > { %p872_p11 = scmp.ge.s32.totalorder %s1196_s16, 1  ;;  %s131_s20 = scalar_lea.sflag [#allocation3], %s130_s26 }
  0x16   : > { %p1104_p12 = pneg %p1294_p10  ;;  %s1115_s21 = scalar_lea.vmem %s145_s5, 2048 }
  0x17   : > { %p1116_p13 = scmp.ne.s32.totalorder %s145_s5, %s1115_s21  ;;  %s1198_s24 = smov [#allocation2]  }
  0x18   : > { %s1120_s25 = sshll.u32 %s1198_s24, 4  ;;  %s1121_s25 = int_to_ptr.vmem [resolvable:$false] %s1120_s25 }
  0x19   : > { %p1118_p0 = pnand %p1116_p13, %p1104_p12  ;;  %s1122_s27 = scalar_lea.vmem %s1121_s25, 4096 }
  0x1a   : > { %p1123_p2 = scmp.lt.s32.totalorder %s145_s5, %s1121_s25  ;;  %p1124_p3 = scmp.lt.s32.totalorder %s1122_s27, %s1115_s21 }
  0x1b   : > { %p1119_p1 = pneg %p1118_p0 }
  0x1c   : > { %p1125_p4 = por %p1124_p3, %p1123_p2 }
  0x1e   : > { %p1126_p5 = pnand %p1125_p4, %p1119_p1 }
  0x20   : > { %1129 = shalt.err (!%p1126_p5)
}
  0x21   : > { %s1199_s22 = smov 128   ;;  %s1200_s26 = smov 8  }
  0x22   : > { %985 = dma.hbm_to_vmem [thread:$0]  (!%p1294_p10), %s143_s9, 2048, %s145_s5, %s131_s20, %s1199_s22, %s1199_s22, %s1200_s26  }
  0x23   : > { %p152_p6 = scmp.lt.s32.totalorder %s1196_s16, 5 }
  0x25   : > { %p153_p8 = pnand %p872_p11, %p152_p6 }
  0x26   : > { %s158_s28 = sand.u32 (!%p153_p8), 1, %s1172_s10  }
  0x27   : > { %156 = sbr.rel (%p153_p8) target bundleno = 324 (0x144), region = 24  ;;  %s873_s30 = sshll.u32 (!%p153_p8), %s158_s28, 7 }
  0x28   : > { %s159_s3 = scalar_lea.sflag (!%p153_p8), [#allocation3], %s158_s28  ;;  %s1307_s4 = scalar_lea.vmem (!%p153_p8), [#allocation2], %s873_s30 }
  0x2c   : > { %1163 = dma.done.wait (%p1274_p7), %s159_s3, 2048  }
  0x2d   : > { %1165 = vsyncadd (%p1274_p7), %s159_s3, 4294965248  ;;  %s896_s6 = sshll.u32 %s1180_s12, 7  ;;  %v413_v0 = vlaneseq  ;;  %v1201_v1 = vmov 1065369472   ;;  %v1340_v11 = vld [vmem:[%s1307_s4] sm:$0xff]  ;;  %v1343_v12 = vld [vmem:[%s1307_s4 + $0x8] sm:$0xff] }
  0x2e   : > { %900 = vmatprep.subr.bf16.mxu0 %v1201_v1  ;;  %964 = vmatprep.subr.bf16.mxu1 %v1201_v1  ;;  %v1324_v4 = vstv %s896_s6  ;;  %v1346_v13 = vld [vmem:[%s1307_s4 + $0x40] sm:$0xff]  ;;  %v881_v16 = vcombine.high %v1340_v11, %v1343_v12  ;;  %v1353_v17 = vld [vmem:[%s1307_s4 + $0x48] sm:$0xff]  ;;  %v1358_v19 = vld [vmem:[%s1307_s4 + $0x10] sm:$0xff]  ;;  %v880_v27 = vcombine.low %v1340_v11, %v1343_v12  ;;  %s874_s23 = sshll.u32 %s1180_s12, 4  ;;  %p198_p7 = scmp.lt.s32.totalorder %s1184_s13, 1 }
  0x2f   : > { %901 = vmatpush3.bf16.msra.mxu0 %v1201_v1  ;;  %972 = vmatpush3.bf16.msra.mxu1 %v1201_v1  ;;  %v1318_v2 = vshrl.u32 %v413_v0, 7  ;;  %v1320_v3 = vand.u32 127, %v413_v0  ;;  %v889_v18 = vcombine.high %v1346_v13, %v1353_v17  ;;  %v1361_v20 = vld [vmem:[%s1307_s4 + $0x18] sm:$0xff]  ;;  %v888_v28 = vcombine.low %v1346_v13, %v1353_v17  ;;  %v1422_v46 = vld [vmem:[%s1307_s4 + $0x28] sm:$0xff]  ;;  %v1432_v53 = vld [vmem:[%s1307_s4 + $0x20] sm:$0xff]  ;;  %p200_p9 = scmp.lt.s32.totalorder %s874_s23, 31 }
  0x30   : > { %902 = vmatprep.subr.bf16.mxu0 %v1201_v1  ;;  %965 = vmatprep.subr.bf16.mxu1 %v1201_v1  ;;  %v883_v29 = vcombine.high %v1358_v19, %v1361_v20  ;;  %v1442_v58 = vld [vmem:[%s1307_s4 + $0x38] sm:$0xff]  ;;  %v1449_v63 = vld [vmem:[%s1307_s4 + $0x30] sm:$0xff]  ;;  %s1702_s13 = smov (!%p198_p7, %s1184_s13), 1 }
  0x31   : > { %v416_v5 = vadd.s32 16, %v1318_v2  ;;  %v417_v6 = vadd.s32 24, %v1318_v2  ;;  %v1329_v7 = vadd.s32 128, %v1320_v3  ;;  %v431_v9 = vadd.s32 %v1324_v4, %v1318_v2  ;;  %347 = vmatprep.mubr.bf16.mxu0 %v881_v16  ;;  %379 = vmatprep.mubr.bf16.mxu1 %v889_v18  ;;  %s1704_s23 = smov (!%p200_p9, %s874_s23), 31  ;;  %s875_s5 = sshll.u32 %s1702_s13, 5 }
  0x32   : > { %v415_v10 = vadd.s32 8, %v1318_v2  ;;  %v419_v15 = vadd.s32 40, %v1318_v2  ;;  %v418_v21 = vadd.s32 32, %v1318_v2  ;;  %v421_v23 = vadd.s32 56, %v1318_v2  ;;  %s1529_s7 = sadd.s32 %s875_s5, %s1704_s23 }
  0x33   : > { %903 = vmatpush3.bf16.msra.mxu0 %v1201_v1  ;;  %973 = vmatpush3.bf16.msra.mxu1 %v1201_v1  ;;  %v433_v8 = vadd.s32 %v1324_v4, %v416_v5  ;;  %v434_v14 = vadd.s32 %v1324_v4, %v417_v6  ;;  %vm450_vm2 = vcmp.eq.s32.totalorder %v431_v9, %v1320_v3  ;;  %v420_v25 = vadd.s32 48, %v1318_v2  ;;  %s876_s8 = sshll.u32 %s1529_s7, 3 }
  0x34   : > { %904 = vmatprep.subr.bf16.mxu0 %v1201_v1  ;;  %966 = vmatprep.subr.bf16.mxu1 %v1201_v1  ;;  %vm451_vm3 = vcmp.eq.s32.totalorder %v431_v9, %v1329_v7  ;;  %v432_v22 = vadd.s32 %v1324_v4, %v415_v10  ;;  %v436_v24 = vadd.s32 %v1324_v4, %v419_v15  ;;  %v1378_v26 = vadd.s32 72, %v1318_v2  ;;  %s1537_s13 = scalar_lea.vmem %s1684_s2, %s876_s8  ;;  %s1616_s21 = scalar_lea.vmem %s1683_s1, %s876_s8 }
  0x35   : > { %vm454_vm0 = vcmp.eq.s32.totalorder %v433_v8, %v1320_v3  ;;  %vm455_vm1 = vcmp.eq.s32.totalorder %v433_v8, %v1329_v7  ;;  %vm456_vm4 = vcmp.eq.s32.totalorder %v434_v14, %v1320_v3  ;;  %v1391_v30 = vadd.s32 64, %v1318_v2  ;;  %vm482_vm6 = vmpackc.low %vm451_vm3, %vm450_vm2 }
  0x36   : > { %vm484_vm5 = vmpackc.low %vm455_vm1, %vm454_vm0  ;;  %vm457_vm7 = vcmp.eq.s32.totalorder %v434_v14, %v1329_v7  ;;  %v1400_v32 = vadd.s32 88, %v1318_v2  ;;  %v1403_v33 = vadd.s32 80, %v1318_v2  ;;  %v498_v36 = vsel %vm482_vm6, %v1340_v11, 0 }
  0x37   : > { %905 = vmatpush3.bf16.msra.mxu0 %v1201_v1  ;;  %974 = vmatpush3.bf16.msra.mxu1 %v1201_v1  ;;  %v500_v31 = vsel %vm484_vm5, %v1358_v19, 0  ;;  %vm485_vm8 = vmpackc.low %vm457_vm7, %vm456_vm4  ;;  %vm452_vm9 = vcmp.eq.s32.totalorder %v432_v22, %v1320_v3  ;;  %v514_v37 = vunpack.c.l.bf16 %v498_v36  ;;  %v515_v38 = vunpack.c.h.bf16 %v498_v36 }
  0x38   : > { %906 = vmatprep.subr.bf16.mxu0 %v1201_v1  ;;  %967 = vmatprep.subr.bf16.mxu1 %v1201_v1  ;;  %v518_v34 = vunpack.c.l.bf16 %v500_v31  ;;  %v519_v35 = vunpack.c.h.bf16 %v500_v31  ;;  %v501_v39 = vsel %vm485_vm8, %v1361_v20, 0  ;;  %vm453_vm10 = vcmp.eq.s32.totalorder %v432_v22, %v1329_v7 }
  0x39   : > { %v520_v41 = vunpack.c.l.bf16 %v501_v39  ;;  %v521_v42 = vunpack.c.h.bf16 %v501_v39  ;;  %vm483_vm11 = vmpackc.low %vm453_vm10, %vm452_vm9  ;;  %vm460_vm12 = vcmp.eq.s32.totalorder %v436_v24, %v1320_v3  ;;  %v546_v43 = vadd.f32 %v515_v38, %v514_v37 }
  0x3a   : > { %v552_v40 = vadd.f32 %v519_v35, %v518_v34  ;;  %v499_v44 = vsel %vm483_vm11, %v1343_v12, 0  ;;  %vm461_vm13 = vcmp.eq.s32.totalorder %v436_v24, %v1329_v7  ;;  %v435_v45 = vadd.s32 %v1324_v4, %v418_v21  ;;  %v1472_v24 = vld [vmem:[%s1307_s4 + $0x58] sm:$0xff] }
  0x3b   : > { %907 = vmatpush3.bf16.msra.mxu0 %v1201_v1  ;;  %975 = vmatpush3.bf16.msra.mxu1 %v1201_v1  ;;  %v555_v47 = vadd.f32 %v521_v42, %v520_v41  ;;  %v516_v48 = vunpack.c.l.bf16 %v499_v44  ;;  %v517_v49 = vunpack.c.h.bf16 %v499_v44  ;;  %vm487_vm14 = vmpackc.low %vm461_vm13, %vm460_vm12  ;;  %v438_v50 = vadd.s32 %v1324_v4, %v421_v23  ;;  %v1469_v23 = vld [vmem:[%s1307_s4 + $0x50] sm:$0xff] }
  0x3c   : > { %908 = vmatprep.subr.bf16.mxu0 %v1201_v1  ;;  %968 = vmatprep.subr.bf16.mxu1 %v1201_v1  ;;  %v503_v51 = vsel %vm487_vm14, %v1422_v46, 0  ;;  %vm458_vm15 = vcmp.eq.s32.totalorder %v435_v45, %v1320_v3  ;;  %vm459_vm0 = vcmp.eq.s32.totalorder %v435_v45, %v1329_v7  ;;  %v437_v52 = vadd.s32 %v1324_v4, %v420_v25 }
  0x3d   : > { %553 = vadd.xlane.f32.xlu1 %v552_v40  ;;  %547 = vadd.xlane.f32.xlu0 %v546_v43  ;;  %v549_v54 = vadd.f32 %v517_v49, %v516_v48  ;;  %v524_v55 = vunpack.c.l.bf16 %v503_v51  ;;  %v525_v56 = vunpack.c.h.bf16 %v503_v51  ;;  %vm486_vm1 = vmpackc.low %vm459_vm0, %vm458_vm15  ;;  %vm464_vm2 = vcmp.eq.s32.totalorder %v438_v50, %v1320_v3 }
  0x3e   : > { %v502_v57 = vsel %vm486_vm1, %v1432_v53, 0  ;;  %vm465_vm3 = vcmp.eq.s32.totalorder %v438_v50, %v1329_v7  ;;  %vm462_vm4 = vcmp.eq.s32.totalorder %v437_v52, %v1320_v3  ;;  %vm463_vm5 = vcmp.eq.s32.totalorder %v437_v52, %v1329_v7  ;;  %v232_v50 = vld [vmem:[%s1307_s4 + $0x68] sm:$0xff] }
  0x3f   : > { %909 = vmatpush3.bf16.msra.mxu0 %v1201_v1  ;;  %976 = vmatpush3.bf16.msra.mxu1 %v1201_v1  ;;  %v561_v59 = vadd.f32 %v525_v56, %v524_v55  ;;  %v522_v60 = vunpack.c.l.bf16 %v502_v57  ;;  %v523_v61 = vunpack.c.h.bf16 %v502_v57  ;;  %vm489_vm6 = vmpackc.low %vm465_vm3, %vm464_vm2  ;;  %v440_v62 = vadd.s32 %v1324_v4, %v1378_v26 }
  0x40   : > { %910 = vmatprep.subr.bf16.mxu0 %v1201_v1  ;;  %969 = vmatprep.subr.bf16.mxu1 %v1201_v1  ;;  %v505_v0 = vsel %vm489_vm6, %v1442_v58, 0  ;;  %vm488_vm7 = vmpackc.low %vm463_vm5, %vm462_vm4  ;;  %v439_v5 = vadd.s32 %v1324_v4, %v1391_v30  ;;  %v442_v6 = vadd.s32 %v1324_v4, %v1400_v32  ;;  %v441_v8 = vadd.s32 %v1324_v4, %v1403_v33 }
  0x41   : > { %556 = vadd.xlane.f32.xlu1 %v555_v47  ;;  %550 = vadd.xlane.f32.xlu0 %v549_v54  ;;  %v558_v9 = vadd.f32 %v523_v61, %v522_v60  ;;  %v528_v10 = vunpack.c.l.bf16 %v505_v0  ;;  %v529_v14 = vunpack.c.h.bf16 %v505_v0  ;;  %v504_v15 = vsel %vm488_vm7, %v1449_v63, 0  ;;  %v234_v54 = vld [vmem:[%s1307_s4 + $0x78] sm:$0xff] }
  0x42   : > { %v526_v16 = vunpack.c.l.bf16 %v504_v15  ;;  %v527_v18 = vunpack.c.h.bf16 %v504_v15  ;;  %vm468_vm8 = vcmp.eq.s32.totalorder %v440_v62, %v1320_v3  ;;  %vm469_vm9 = vcmp.eq.s32.totalorder %v440_v62, %v1329_v7 }
  0x43   : > { %911 = vmatpush3.bf16.msra.mxu0 %v1201_v1  ;;  %977 = vmatpush3.bf16.msra.mxu1 %v1201_v1  ;;  %v567_v21 = vadd.f32 %v529_v14, %v528_v10  ;;  %vm491_vm10 = vmpackc.low %vm469_vm9, %vm468_vm8  ;;  %vm466_vm11 = vcmp.eq.s32.totalorder %v439_v5, %v1320_v3  ;;  %vm467_vm12 = vcmp.eq.s32.totalorder %v439_v5, %v1329_v7  ;;  %v427_v22 = vadd.s32 104, %v1318_v2 }
  0x44   : > { %912 = vmatprep.subr.bf16.mxu0 %v1201_v1  ;;  %970 = vmatprep.subr.bf16.mxu1 %v1201_v1  ;;  %v564_v25 = vadd.f32 %v527_v18, %v526_v16  ;;  %v507_v26 = vsel %vm491_vm10, %v1353_v17, 0  ;;  %vm490_vm13 = vmpackc.low %vm467_vm12, %vm466_vm11  ;;  %vm472_vm14 = vcmp.eq.s32.totalorder %v442_v6, %v1320_v3  ;;  %vm473_vm15 = vcmp.eq.s32.totalorder %v442_v6, %v1329_v7 }
  0x45   : > { %562 = vadd.xlane.f32.xlu1 %v561_v59  ;;  %559 = vadd.xlane.f32.xlu0 %v558_v9  ;;  %v532_v30 = vunpack.c.l.bf16 %v507_v26  ;;  %v533_v31 = vunpack.c.h.bf16 %v507_v26  ;;  %v506_v32 = vsel %vm490_vm13, %v1346_v13, 0  ;;  %vm493_vm0 = vmpackc.low %vm473_vm15, %vm472_vm14  ;;  %vm470_vm1 = vcmp.eq.s32.totalorder %v441_v8, %v1320_v3  ;;  %v231_v13 = vld [vmem:[%s1307_s4 + $0x60] sm:$0xff] }
  0x46   : > { %v530_v33 = vunpack.c.l.bf16 %v506_v32  ;;  %v531_v34 = vunpack.c.h.bf16 %v506_v32  ;;  %v509_v35 = vsel %vm493_vm0, %v1472_v24, 0  ;;  %vm471_vm2 = vcmp.eq.s32.totalorder %v441_v8, %v1329_v7 }
  0x47   : > { %913 = vmatpush3.bf16.msra.mxu0 %v1201_v1  ;;  %978 = vmatpush3.bf16.msra.mxu1 %v1201_v1  ;;  %v891_v36 = vcombine.high %v1469_v23, %v1472_v24  ;;  %v536_v37 = vunpack.c.l.bf16 %v509_v35  ;;  %v537_v38 = vunpack.c.h.bf16 %v509_v35  ;;  %vm492_vm3 = vmpackc.low %vm471_vm2, %vm470_vm1  ;;  %v444_v39 = vadd.s32 %v1324_v4, %v427_v22 }
  0x48   : > { %914 = vmatprep.subr.bf16.mxu0 %v1201_v1  ;;  %971 = vmatprep.subr.bf16.mxu1 %v1201_v1  ;;  %v573_v40 = vadd.f32 %v533_v31, %v532_v30  ;;  %v508_v41 = vsel %vm492_vm3, %v1469_v23, 0  ;;  %v426_v42 = vadd.s32 96, %v1318_v2  ;;  %v429_v43 = vadd.s32 120, %v1318_v2 }
  0x49   : > { %568 = vadd.xlane.f32.xlu1 %v567_v21  ;;  %565 = vadd.xlane.f32.xlu0 %v564_v25  ;;  %v570_v44 = vadd.f32 %v531_v34, %v530_v33  ;;  %v535_v45 = vunpack.c.h.bf16 %v508_v41  ;;  %vm476_vm4 = vcmp.eq.s32.totalorder %v444_v39, %v1320_v3  ;;  %vm477_vm5 = vcmp.eq.s32.totalorder %v444_v39, %v1329_v7 }
  0x4a   : > { %v443_v47 = vadd.s32 %v1324_v4, %v426_v42  ;;  %v446_v48 = vadd.s32 %v1324_v4, %v429_v43  ;;  %v428_v49 = vadd.s32 112, %v1318_v2  ;;  %v579_v11 = vadd.f32 %v537_v38, %v536_v37  ;;  %vm495_vm6 = vmpackc.low %vm477_vm5, %vm476_vm4 }
  0x4b   : > { %915 = vmatpush3.bf16.msra.mxu0 %v1201_v1  ;;  %979 = vmatpush3.bf16.msra.mxu1 %v1201_v1  ;;  %v534_v1 = vunpack.c.l.bf16 %v508_v41  ;;  %v511_v17 = vsel %vm495_vm6, %v232_v50, 0  ;;  %v890_v51 = vcombine.low %v1469_v23, %v1472_v24  ;;  %v885_v52 = vcombine.high %v1432_v53, %v1422_v46 }
  0x4c   : > { %vm474_vm7 = vcmp.eq.s32.totalorder %v443_v47, %v1320_v3  ;;  %vm475_vm8 = vcmp.eq.s32.totalorder %v443_v47, %v1329_v7  ;;  %vm480_vm9 = vcmp.eq.s32.totalorder %v446_v48, %v1320_v3  ;;  %v540_v2 = vunpack.c.l.bf16 %v511_v17 }
  0x4d   : > { %v576_v12 = vadd.f32 %v535_v45, %v534_v1  ;;  %574 = vadd.xlane.f32.xlu1 %v573_v40  ;;  %571 = vadd.xlane.f32.xlu0 %v570_v44  ;;  %vm494_vm10 = vmpackc.low %vm475_vm8, %vm474_vm7  ;;  %vm481_vm11 = vcmp.eq.s32.totalorder %v446_v48, %v1329_v7  ;;  %v893_v56 = vcombine.high %v231_v13, %v232_v50  ;;  %vm682_vm0 = vcmask 7168  }
  0x4e   : > { %348 = vmatmul.mubr.bf16.vlgmr.msra.gmra.mxu0 %v880_v27  ;;  %380 = vmatmul.mubr.bf16.vlgmr.msra.gmra.mxu1 %v888_v28  ;;  %v541_v27 = vunpack.c.h.bf16 %v511_v17  ;;  %v445_v28 = vadd.s32 %v1324_v4, %v428_v49  ;;  %v510_v55 = vsel %vm494_vm10, %v231_v13, 0  ;;  %vm497_vm12 = vmpackc.low %vm481_vm11, %vm480_vm9  ;;  %v233_v4 = vld [vmem:[%s1307_s4 + $0x70] sm:$0xff]  ;;  %v884_v8 = vcombine.low %v1432_v53, %v1422_v46 }
  0x4f   : > { %355 = vmatprep.mubr.bf16.mxu0 %v883_v29  ;;  %387 = vmatprep.mubr.bf16.mxu1 %v891_v36  ;;  %v882_v29 = vcombine.low %v1358_v19, %v1361_v20  ;;  %v538_v57 = vunpack.c.l.bf16 %v510_v55  ;;  %v539_v59 = vunpack.c.h.bf16 %v510_v55  ;;  %v513_v60 = vsel %vm497_vm12, %v234_v54, 0 }
  0x50   : > { %vm478_vm13 = vcmp.eq.s32.totalorder %v445_v28, %v1320_v3  ;;  %vm479_vm14 = vcmp.eq.s32.totalorder %v445_v28, %v1329_v7  ;;  %v585_v19 = vadd.f32 %v541_v27, %v540_v2  ;;  %v544_v61 = vunpack.c.l.bf16 %v513_v60 }
  0x51   : > { %580 = vadd.xlane.f32.xlu1 %v579_v11  ;;  %577 = vadd.xlane.f32.xlu0 %v576_v12  ;;  %v582_v20 = vadd.f32 %v539_v59, %v538_v57  ;;  %v545_v62 = vunpack.c.h.bf16 %v513_v60  ;;  %vm496_vm15 = vmpackc.low %vm479_vm14, %vm478_vm13  ;;  %v892_v9 = vcombine.low %v231_v13, %v232_v50  ;;  %v887_v10 = vcombine.high %v1449_v63, %v1442_v58 }
  0x52   : > { %v512_v0 = vsel %vm496_vm15, %v233_v4, 0  ;;  %v895_v14 = vcombine.high %v233_v4, %v234_v54  ;;  %v886_v15 = vcombine.low %v1449_v63, %v1442_v58  ;;  %v894_v16 = vcombine.low %v233_v4, %v234_v54 }
  0x53   : > { %v542_v5 = vunpack.c.l.bf16 %v512_v0  ;;  %v543_v6 = vunpack.c.h.bf16 %v512_v0  ;;  %v591_v3 = vadd.f32 %v545_v62, %v544_v61 }
  0x55   : > { %586 = vadd.xlane.f32.xlu1 %v585_v19  ;;  %583 = vadd.xlane.f32.xlu0 %v582_v20  ;;  %v588_v7 = vadd.f32 %v543_v6, %v542_v5 }
  0x56   : > { %356 = vmatmul.mubr.bf16.gmra.mxu0 %v882_v29  ;;  %388 = vmatmul.mubr.bf16.gmra.mxu1 %v890_v51 }
  0x57   : > { %363 = vmatprep.mubr.bf16.mxu0 %v885_v52  ;;  %395 = vmatprep.mubr.bf16.mxu1 %v893_v56 }
  0x59   : > { %592 = vadd.xlane.f32.xlu1 %v591_v3  ;;  %589 = vadd.xlane.f32.xlu0 %v588_v7 }
  0x5e   : > { %364 = vmatmul.mubr.bf16.gmra.mxu0 %v884_v8  ;;  %396 = vmatmul.mubr.bf16.gmra.mxu1 %v892_v9 }
  0x5f   : > { %371 = vmatprep.mubr.bf16.mxu0 %v887_v10  ;;  %403 = vmatprep.mubr.bf16.mxu1 %v895_v14 }
  0x66   : > { %372 = vmatmul.mubr.bf16.gmra.mxu0 %v886_v15  ;;  %404 = vmatmul.mubr.bf16.gmra.mxu1 %v894_v16 }
  0xc6   : > { %v554_v46 = vpop.xlane.xlu1 %553  ;;  %v548_v53 = vpop.xlane.xlu0 %547 }
  0xca   : > { %v557_v18 = vpop.xlane.xlu1 %556  ;;  %v551_v21 = vpop.xlane.xlu0 %550 }
  0xcb   : > { %v595_v22 = vpack.c.bf16 %v557_v18, %v554_v46  ;;  %v594_v58 = vpack.c.bf16 %v551_v21, %v548_v53 }
  0xcd   : > { %v604_v63 = vunpack.c.l.bf16 %v595_v22  ;;  %v605_v23 = vunpack.c.h.bf16 %v595_v22  ;;  %v602_v24 = vunpack.c.l.bf16 %v594_v58  ;;  %v603_v25 = vunpack.c.h.bf16 %v594_v58 }
  0xce   : > { %v563_v26 = vpop.xlane.xlu1 %562  ;;  %v560_v30 = vpop.xlane.xlu0 %559 }
  0xcf   : > { %v1539_v31 = vsub.f32 1.0, %v604_v63  ;;  %v1541_v32 = vsub.f32 1.0, %v605_v23  ;;  %v1543_v33 = vsub.f32 1.0, %v602_v24  ;;  %v1545_v34 = vsub.f32 1.0, %v603_v25 }
  0xd0   : > { %v596_v35 = vpack.c.bf16 %v563_v26, %v560_v30 }
  0xd1   : > { %701 = vst.msk [vmem:[%s1537_s13 + $0x10] sm:$0xff] %vm682_vm0, %v1539_v31  ;;  %702 = vst.msk [vmem:[%s1537_s13 + $0x18] sm:$0xff] %vm682_vm0, %v1541_v32 }
  0xd2   : > { %699 = vst.msk [vmem:[%s1537_s13] sm:$0xff] %vm682_vm0, %v1543_v33  ;;  %700 = vst.msk [vmem:[%s1537_s13 + $0x8] sm:$0xff] %vm682_vm0, %v1545_v34  ;;  %v606_v36 = vunpack.c.l.bf16 %v596_v35  ;;  %v607_v37 = vunpack.c.h.bf16 %v596_v35  ;;  %v569_v38 = vpop.xlane.xlu1 %568  ;;  %v566_v39 = vpop.xlane.xlu0 %565 }
  0xd3   : > { %v597_v40 = vpack.c.bf16 %v569_v38, %v566_v39 }
  0xd4   : > { %v1559_v41 = vsub.f32 1.0, %v606_v36  ;;  %v1561_v42 = vsub.f32 1.0, %v607_v37 }
  0xd5   : > { %v608_v43 = vunpack.c.l.bf16 %v597_v40  ;;  %v609_v44 = vunpack.c.h.bf16 %v597_v40 }
  0xd6   : > { %703 = vst.msk [vmem:[%s1537_s13 + $0x20] sm:$0xff] %vm682_vm0, %v1559_v41  ;;  %704 = vst.msk [vmem:[%s1537_s13 + $0x28] sm:$0xff] %vm682_vm0, %v1561_v42  ;;  %v575_v1 = vpop.xlane.xlu1 %574  ;;  %v572_v45 = vpop.xlane.xlu0 %571 }
  0xd7   : > { %v1569_v47 = vsub.f32 1.0, %v608_v43  ;;  %v1571_v48 = vsub.f32 1.0, %v609_v44  ;;  %v598_v49 = vpack.c.bf16 %v575_v1, %v572_v45 }
  0xd9   : > { %705 = vst.msk [vmem:[%s1537_s13 + $0x30] sm:$0xff] %vm682_vm0, %v1569_v47  ;;  %706 = vst.msk [vmem:[%s1537_s13 + $0x38] sm:$0xff] %vm682_vm0, %v1571_v48  ;;  %v610_v50 = vunpack.c.l.bf16 %v598_v49  ;;  %v611_v11 = vunpack.c.h.bf16 %v598_v49 }
  0xda   : > { %v581_v12 = vpop.xlane.xlu1 %580  ;;  %v578_v13 = vpop.xlane.xlu0 %577 }
  0xdb   : > { %v626_v17 = vsub.f32 1.0, %v610_v50  ;;  %v627_v2 = vsub.f32 1.0, %v611_v11  ;;  %v599_v27 = vpack.c.bf16 %v581_v12, %v578_v13 }
  0xdd   : > { %707 = vst.msk [vmem:[%s1537_s13 + $0x40] sm:$0xff] %vm682_vm0, %v626_v17  ;;  %708 = vst.msk [vmem:[%s1537_s13 + $0x48] sm:$0xff] %vm682_vm0, %v627_v2  ;;  %v612_v28 = vunpack.c.l.bf16 %v599_v27  ;;  %v613_v29 = vunpack.c.h.bf16 %v599_v27 }
  0xde   : > { %v587_v51 = vpop.xlane.xlu1 %586  ;;  %v584_v52 = vpop.xlane.xlu0 %583 }
  0xdf   : > { %v628_v54 = vsub.f32 1.0, %v612_v28  ;;  %v629_v55 = vsub.f32 1.0, %v613_v29  ;;  %v600_v56 = vpack.c.bf16 %v587_v51, %v584_v52 }
  0xe1   : > { %709 = vst.msk [vmem:[%s1537_s13 + $0x50] sm:$0xff] %vm682_vm0, %v628_v54  ;;  %710 = vst.msk [vmem:[%s1537_s13 + $0x58] sm:$0xff] %vm682_vm0, %v629_v55  ;;  %v614_v57 = vunpack.c.l.bf16 %v600_v56  ;;  %v615_v59 = vunpack.c.h.bf16 %v600_v56 }
  0xe2   : > { %v593_v60 = vpop.xlane.xlu1 %592  ;;  %v590_v4 = vpop.xlane.xlu0 %589 }
  0xe3   : > { %v1587_v19 = vsub.f32 1.0, %v614_v57  ;;  %v1589_v20 = vsub.f32 1.0, %v615_v59  ;;  %v601_v61 = vpack.c.bf16 %v593_v60, %v590_v4 }
  0xe5   : > { %711 = vst.msk [vmem:[%s1537_s13 + $0x60] sm:$0xff] %vm682_vm0, %v1587_v19  ;;  %712 = vst.msk [vmem:[%s1537_s13 + $0x68] sm:$0xff] %vm682_vm0, %v1589_v20  ;;  %v616_v62 = vunpack.c.l.bf16 %v601_v61  ;;  %v617_v0 = vunpack.c.h.bf16 %v601_v61 }
  0xe7   : > { %v1597_v5 = vsub.f32 1.0, %v616_v62  ;;  %v1599_v6 = vsub.f32 1.0, %v617_v0 }
  0xe9   : > { %713 = vst.msk [vmem:[%s1537_s13 + $0x70] sm:$0xff] %vm682_vm0, %v1597_v5  ;;  %714 = vst.msk [vmem:[%s1537_s13 + $0x78] sm:$0xff] %vm682_vm0, %v1599_v6 }
 0x10e   : > { %v916_v3 = vpop.f32.mrf.mxu0  ;;  %v940_v7 = vpop.f32.mrf.mxu1 }
 0x110   : > { %v917_v8 = vpop.f32.mrf.mxu0  ;;  %v941_v9 = vpop.f32.mrf.mxu1 }
 0x111   : > { %v918_v10 = vadd.f32 %v917_v8, %v916_v3  ;;  %v942_v14 = vadd.f32 %v941_v9, %v940_v7 }
 0x112   : > { %v919_v15 = vpop.f32.mrf.mxu0  ;;  %v943_v16 = vpop.f32.mrf.mxu1 }
 0x113   : > { %v634_v46 = vadd.f32 %v918_v10, %v1543_v33  ;;  %v642_v53 = vadd.f32 %v942_v14, %v626_v17 }
 0x114   : > { %v944_v18 = vpop.f32.mrf.mxu1  ;;  %v920_v21 = vpop.f32.mrf.mxu0 }
 0x115   : > { %v650_v22 = vmax.f32 %v634_v46, 1.0  ;;  %v658_v58 = vmax.f32 %v642_v53, 1.0  ;;  %v945_v63 = vadd.f32 %v944_v18, %v943_v16  ;;  %v921_v23 = vadd.f32 %v920_v21, %v919_v15 }
 0x116   : > { %v922_v24 = vpop.f32.mrf.mxu0  ;;  %v946_v25 = vpop.f32.mrf.mxu1 }
 0x117   : > { %1070 = vrsqrt.f32 %v650_v22  ;;  %v643_v26 = vadd.f32 %v945_v63, %v627_v2  ;;  %v635_v30 = vadd.f32 %v921_v23, %v1545_v34 }
 0x118   : > { %1072 = vrsqrt.f32 %v658_v58  ;;  %v923_v35 = vpop.f32.mrf.mxu0  ;;  %v947_v36 = vpop.f32.mrf.mxu1 }
 0x119   : > { %v659_v37 = vmax.f32 %v643_v26, 1.0  ;;  %v651_v38 = vmax.f32 %v635_v30, 1.0  ;;  %v924_v39 = vadd.f32 %v923_v35, %v922_v24  ;;  %v948_v33 = vadd.f32 %v947_v36, %v946_v25 }
 0x11a   : > { %v925_v40 = vpop.f32.mrf.mxu0  ;;  %v949_v43 = vpop.f32.mrf.mxu1 }
 0x11b   : > { %1074 = vrsqrt.f32 %v659_v37  ;;  %v636_v44 = vadd.f32 %v924_v39, %v1539_v31  ;;  %v644_v1 = vadd.f32 %v948_v33, %v628_v54 }
 0x11c   : > { %1076 = vrsqrt.f32 %v651_v38  ;;  %v950_v45 = vpop.f32.mrf.mxu1  ;;  %v926_v49 = vpop.f32.mrf.mxu0 }
 0x11d   : > { %v652_v50 = vmax.f32 %v636_v44, 1.0  ;;  %v660_v11 = vmax.f32 %v644_v1, 1.0  ;;  %v951_v34 = vadd.f32 %v950_v45, %v949_v43  ;;  %v927_v12 = vadd.f32 %v926_v49, %v925_v40 }
 0x11e   : > { %v928_v13 = vpop.f32.mrf.mxu0  ;;  %v952_v17 = vpop.f32.mrf.mxu1 }
 0x11f   : > { %1078 = vrsqrt.f32 %v652_v50  ;;  %v645_v2 = vadd.f32 %v951_v34, %v629_v55  ;;  %v637_v27 = vadd.f32 %v927_v12, %v1541_v32 }
 0x120   : > { %1080 = vrsqrt.f32 %v660_v11  ;;  %v929_v28 = vpop.f32.mrf.mxu0  ;;  %v953_v29 = vpop.f32.mrf.mxu1 }
 0x121   : > { %v661_v51 = vmax.f32 %v645_v2, 1.0  ;;  %v653_v31 = vmax.f32 %v637_v27, 1.0  ;;  %v930_v52 = vadd.f32 %v929_v28, %v928_v13  ;;  %v954_v54 = vadd.f32 %v953_v29, %v952_v17 }
 0x122   : > { %v931_v56 = vpop.f32.mrf.mxu0  ;;  %v955_v57 = vpop.f32.mrf.mxu1 }
 0x123   : > { %1082 = vrsqrt.f32 %v661_v51  ;;  %v638_v32 = vadd.f32 %v930_v52, %v1559_v41  ;;  %v646_v55 = vadd.f32 %v954_v54, %v1587_v19 }
 0x124   : > { %v1071_v59 = vpop.eup %1070  ;;  %1084 = vrsqrt.f32 %v653_v31  ;;  %v956_v60 = vpop.f32.mrf.mxu1 }
 0x125   : > { %v932_v4 = vpop.f32.mrf.mxu0  ;;  %v1073_v61 = vpop.eup %1072  ;;  %683 = vst.msk [vmem:[%s1616_s21] sm:$0xff] %vm682_vm0, %v1071_v59  ;;  %v654_v62 = vmax.f32 %v638_v32, 1.0  ;;  %v662_v0 = vmax.f32 %v646_v55, 1.0  ;;  %v957_v3 = vadd.f32 %v956_v60, %v955_v57 }
 0x126   : > { %v933_v7 = vadd.f32 %v932_v4, %v931_v56  ;;  %691 = vst.msk [vmem:[%s1616_s21 + $0x40] sm:$0xff] %vm682_vm0, %v1073_v61  ;;  %v958_v9 = vpop.f32.mrf.mxu1 }
 0x127   : > { %v934_v8 = vpop.f32.mrf.mxu0  ;;  %1086 = vrsqrt.f32 %v654_v62  ;;  %v647_v41 = vadd.f32 %v957_v3, %v1589_v20 }
 0x128   : > { %v639_v19 = vadd.f32 %v933_v7, %v1561_v42  ;;  %v1075_v10 = vpop.eup %1074  ;;  %1088 = vrsqrt.f32 %v662_v0  ;;  %v959_v15 = vpop.f32.mrf.mxu1 }
 0x129   : > { %v935_v14 = vpop.f32.mrf.mxu0  ;;  %v1077_v16 = vpop.eup %1076  ;;  %692 = vst.msk [vmem:[%s1616_s21 + $0x48] sm:$0xff] %vm682_vm0, %v1075_v10  ;;  %v663_v46 = vmax.f32 %v647_v41, 1.0  ;;  %v960_v21 = vadd.f32 %v959_v15, %v958_v9 }
 0x12a   : > { %v655_v53 = vmax.f32 %v639_v19, 1.0  ;;  %v936_v18 = vadd.f32 %v935_v14, %v934_v8  ;;  %684 = vst.msk [vmem:[%s1616_s21 + $0x8] sm:$0xff] %vm682_vm0, %v1077_v16  ;;  %v961_v58 = vpop.f32.mrf.mxu1 }
 0x12b   : > { %v937_v22 = vpop.f32.mrf.mxu0  ;;  %1090 = vrsqrt.f32 %v663_v46  ;;  %v648_v20 = vadd.f32 %v960_v21, %v1597_v5 }
 0x12c   : > { %v640_v42 = vadd.f32 %v936_v18, %v1569_v47  ;;  %v1079_v63 = vpop.eup %1078  ;;  %1092 = vrsqrt.f32 %v655_v53  ;;  %v962_v24 = vpop.f32.mrf.mxu1 }
 0x12d   : > { %v938_v23 = vpop.f32.mrf.mxu0  ;;  %v1081_v25 = vpop.eup %1080  ;;  %685 = vst.msk [vmem:[%s1616_s21 + $0x10] sm:$0xff] %vm682_vm0, %v1079_v63  ;;  %v664_v30 = vmax.f32 %v648_v20, 1.0  ;;  %v963_v36 = vadd.f32 %v962_v24, %v961_v58 }
 0x12e   : > { %v656_v26 = vmax.f32 %v640_v42, 1.0  ;;  %v939_v35 = vadd.f32 %v938_v23, %v937_v22  ;;  %693 = vst.msk [vmem:[%s1616_s21 + $0x50] sm:$0xff] %vm682_vm0, %v1081_v25 }
 0x12f   : > { %v649_v5 = vadd.f32 %v963_v36, %v1599_v6 }
 0x130   : > { %1094 = vrsqrt.f32 %v656_v26  ;;  %v641_v47 = vadd.f32 %v939_v35, %v1571_v48  ;;  %v1083_v37 = vpop.eup %1082 }
 0x131   : > { %1096 = vrsqrt.f32 %v664_v30  ;;  %v1085_v38 = vpop.eup %1084  ;;  %694 = vst.msk [vmem:[%s1616_s21 + $0x58] sm:$0xff] %vm682_vm0, %v1083_v37  ;;  %v665_v33 = vmax.f32 %v649_v5, 1.0 }
 0x132   : > { %v657_v39 = vmax.f32 %v641_v47, 1.0  ;;  %686 = vst.msk [vmem:[%s1616_s21 + $0x18] sm:$0xff] %vm682_vm0, %v1085_v38 }
 0x134   : > { %1098 = vrsqrt.f32 %v657_v39  ;;  %v1087_v40 = vpop.eup %1086 }
 0x135   : > { %1100 = vrsqrt.f32 %v665_v33  ;;  %v1089_v48 = vpop.eup %1088  ;;  %687 = vst.msk [vmem:[%s1616_s21 + $0x20] sm:$0xff] %vm682_vm0, %v1087_v40 }
 0x136   : > { %695 = vst.msk [vmem:[%s1616_s21 + $0x60] sm:$0xff] %vm682_vm0, %v1089_v48 }
 0x138   : > { %v1091_v6 = vpop.eup %1090 }
 0x139   : > { %v1093_v43 = vpop.eup %1092  ;;  %696 = vst.msk [vmem:[%s1616_s21 + $0x68] sm:$0xff] %vm682_vm0, %v1091_v6 }
 0x13a   : > { %688 = vst.msk [vmem:[%s1616_s21 + $0x28] sm:$0xff] %vm682_vm0, %v1093_v43 }
 0x13d   : > { %v1095_v44 = vpop.eup %1094 }
 0x13e   : > { %v1097_v1 = vpop.eup %1096  ;;  %689 = vst.msk [vmem:[%s1616_s21 + $0x30] sm:$0xff] %vm682_vm0, %v1095_v44 }
 0x13f   : > { %697 = vst.msk [vmem:[%s1616_s21 + $0x70] sm:$0xff] %vm682_vm0, %v1097_v1 }
 0x141   : > { %v1099_v45 = vpop.eup %1098 }
 0x142   : > { %v1101_v49 = vpop.eup %1100  ;;  %690 = vst.msk [vmem:[%s1616_s21 + $0x38] sm:$0xff] %vm682_vm0, %v1099_v45 }
 0x143   : > { %698 = vst.msk [vmem:[%s1616_s21 + $0x78] sm:$0xff] %vm682_vm0, %v1101_v49 }
 0x144 PF: > { %s16_s16 = sadd.s32 1, %s1196_s16   ;;  %s1688_s9 = smov %s1172_s10 }
 0x145   : > { %p13_p10 = scmp.ge.s32.totalorder %s16_s16, 6   ;;  %s1689_s10 = smov %s1176_s11 }
 0x146   : > { %s1690_s11 = smov %s1284_s29  ;;  %s1691_s12 = smov %s1188_s14 }
 0x147   : > { %s1692_s13 = smov %s1192_s15  ;;  %s1693_s14 = smov %s1696_s18 }
 0x148   : > { %s1694_s15 = smov %s1700_s19  ;;  %15 = sbr.rel (!%p13_p10) target bundleno = 5 (0x5), region = 76 }
 0x14d   :  { %770 = vsyncpa [#allocation3], 1 }
 0x14e   :  { %772 = vsyncpa [#allocation3 + $0x1], 1 }

</bundles_post_ra>
